<compile_context>
chip_gen: v6e
topology: v6e:2x2x1
jax: 0.10.0
libtpu: 0.0.40
codegen_flags: <defaults>
</compile_context>

<pallas_src>
import functools

import jax
import jax.numpy as jnp
from jax.experimental import pallas as pl
from jax.experimental.pallas import tpu as pltpu


def _bert_embeddings_kernel(wid_sref,                       # scalar prefetch (SMEM): word ids
                            pid_ref, tt_ref,                # (T, 1) int32 VMEM blocks
                            word_hbm,                       # (V, H) word table, HBM (ANY)
                            pos_ref, ttab_ref,              # pos / type tables, VMEM
                            gamma_ref, beta_ref,            # (1, H) LayerNorm affine
                            out_ref,                        # (T, H) output tile
                            wbuf, sem,                      # scratch: gather buf + DMA sem
                            *, eps, tile):
    H = out_ref.shape[-1]
    P = pos_ref.shape[0]
    base = pl.program_id(0) * tile

    # ---- 1) issue one word-row gather DMA per token (HBM -> VMEM) ----------
    @pl.loop(0, tile)
    def _issue(t):
        wid = wid_sref[base + t]
        pltpu.make_async_copy(word_hbm.at[pl.ds(wid, 1), :],
                              wbuf.at[pl.ds(t, 1), :],
                              sem.at[0]).start()

    # ---- 2) position embedding: one-hot (T,P) @ (P,H) on the MXU -----------
    #         (overlaps with the in-flight word-row DMAs)
    pid = pid_ref[...]                                      # (T, 1) int32
    iota_p = jax.lax.broadcasted_iota(jnp.int32, (tile, P), 1)
    onehot = (pid == iota_p).astype(jnp.float32)            # exact 0/1 -> exact gather
    pos_emb = jnp.dot(onehot, pos_ref[...].astype(jnp.float32),
                      preferred_element_type=jnp.float32)

    # ---- 3) token-type embedding: tiny table -> VPU masked sum (no MXU) ----
    tt = tt_ref[...]                                        # (T, 1) int32
    type_emb = jnp.zeros((tile, H), jnp.float32)
    for v in range(ttab_ref.shape[0]):                      # static, tiny (2 for BERT)
        row = ttab_ref[v, :].astype(jnp.float32).reshape(1, H)
        type_emb = type_emb + jnp.where(tt == v, 1.0, 0.0) * row

    # ---- 4) one aggregate wait for all `tile` row gathers -------------------
    # DMA semaphores are byte-counted: waiting on a descriptor covering the
    # whole buffer retires every row copy that signaled this semaphore.
    pltpu.make_async_copy(wbuf, wbuf, sem.at[0]).wait()

    # ---- 5) sum + LayerNorm (biased variance, matching torch) + affine -----
    x = wbuf[...].astype(jnp.float32) + pos_emb + type_emb
    mean = jnp.mean(x, axis=-1, keepdims=True)
    var = jnp.mean(jnp.square(x - mean), axis=-1, keepdims=True)
    xn = (x - mean) * jax.lax.rsqrt(var + eps)
    out_ref[...] = (xn * gamma_ref[...] + beta_ref[...]).astype(out_ref.dtype)
    # TODO(synk): dropout is identity here (eval mode); training-mode dropout
    # would use pltpu.prng_seed / pltpu.stateful_bernoulli on the tile.


def bert_embeddings(params, input_ids, token_type_ids=None, position_ids=None,
                    *, eps=1e-12, tile=128):
    """Forward pass of BertEmbeddings.  `tile` = tokens per grid step
    (multiple of 8; 128 is a good default, 256 also fine on v6e/v7x)."""
    B, S = input_ids.shape
    word_tab = params["word"]
    pos_tab = params["pos"]
    type_tab = params["type"]
    V, H = word_tab.shape
    P = pos_tab.shape[0]

    if position_ids is None:
        position_ids = jnp.broadcast_to(
            jnp.arange(S, dtype=jnp.int32)[None, :], (B, S))
    if token_type_ids is None:
        token_type_ids = jnp.zeros((B, S), jnp.int32)

    assert tile % 8 == 0, "token tile must be a multiple of 8"
    N = B * S
    n_tiles = pl.cdiv(N, tile)
    Np = n_tiles * tile                      # pad ragged tail instead of asserting

    def flat_clip_pad(x, hi):
        # clamp so an out-of-range id can never become an OOB HBM DMA read
        x = jnp.clip(x.reshape(N).astype(jnp.int32), 0, hi - 1)
        return jnp.pad(x, (0, Np - N))

    wids = flat_clip_pad(input_ids, V)                       # SMEM scalar prefetch
    pids = flat_clip_pad(position_ids, P).reshape(Np, 1)     # VMEM (tile,1) blocks
    tts = flat_clip_pad(token_type_ids, type_tab.shape[0]).reshape(Np, 1)

    grid_spec = pltpu.PrefetchScalarGridSpec(
        num_scalar_prefetch=1,               # word ids -> SMEM (drive gather DMAs)
        grid=(n_tiles,),
        in_specs=[
            pl.BlockSpec((tile, 1), lambda i, wid: (i, 0)),           # position ids
            pl.BlockSpec((tile, 1), lambda i, wid: (i, 0)),           # token types
            pl.BlockSpec(memory_space=pl.ANY),                        # word table (HBM)
            pl.BlockSpec(pos_tab.shape, lambda i, wid: (0, 0)),       # pos table (VMEM)
            pl.BlockSpec(type_tab.shape, lambda i, wid: (0, 0)),      # type table
            pl.BlockSpec((1, H), lambda i, wid: (0, 0)),              # gamma
            pl.BlockSpec((1, H), lambda i, wid: (0, 0)),              # beta
        ],
        out_specs=pl.BlockSpec((tile, H), lambda i, wid: (i, 0)),
        scratch_shapes=[
            pltpu.VMEM((tile, H), word_tab.dtype),   # gathered word rows
            pltpu.SemaphoreType.DMA((1,)),
        ],
    )

    out = pl.pallas_call(
        functools.partial(_bert_embeddings_kernel, eps=eps, tile=tile),
        out_shape=jax.ShapeDtypeStruct((Np, H), jnp.float32),
        grid_spec=grid_spec,
        compiler_params=pltpu.CompilerParams(
            dimension_semantics=("parallel",)),
    )(wids, pids, tts,
      word_tab, pos_tab, type_tab,
      params["gamma"].reshape(1, H), params["beta"].reshape(1, H))

    return out[:N].reshape(B, S, H)


def _reference(input_ids, token_type_ids, position_ids, params, eps=1e-12):
    x = (params["word"][input_ids]
         + params["pos"][position_ids]
         + params["type"][token_type_ids])
    mean = jnp.mean(x, axis=-1, keepdims=True)
    var = jnp.mean(jnp.square(x - mean), axis=-1, keepdims=True)
    xn = (x - mean) / jnp.sqrt(var + eps)
    return xn * params["gamma"] + params["beta"]


if __name__ == "__main__":
    # Small synthetic BERT config (H multiple of 128 -> lane-dense output)
    vocab_size = 512
    max_position_embeddings = 128
    type_vocab_size = 2
    hidden_size = 128
    layer_norm_eps = 1e-12
    B, S = 2, 128

    key = jax.random.PRNGKey(0)
    k_w, k_p, k_t, k_g, k_b, k_ids, k_tt = jax.random.split(key, 7)

    word_tab = 0.02 * jax.random.normal(k_w, (vocab_size, hidden_size), jnp.float32)
    word_tab = word_tab.at[0].set(0.0)   # nn.Embedding(padding_idx=0) init
    pos_tab = 0.02 * jax.random.normal(
        k_p, (max_position_embeddings, hidden_size), jnp.float32)
    type_tab = 0.02 * jax.random.normal(
        k_t, (type_vocab_size, hidden_size), jnp.float32)
    gamma = 1.0 + 0.01 * jax.random.normal(k_g, (hidden_size,), jnp.float32)
    beta = 0.01 * jax.random.normal(k_b, (hidden_size,), jnp.float32)

    params = {"word": word_tab, "pos": pos_tab, "type": type_tab,
              "gamma": gamma, "beta": beta}

    input_ids = jax.random.randint(k_ids, (B, S), 0, vocab_size, dtype=jnp.int32)
    token_type_ids = jax.random.randint(k_tt, (B, S), 0, type_vocab_size,
                                        dtype=jnp.int32)

    # position_ids=None -> default arange(S) per sequence, like the torch module
    out = bert_embeddings(params, input_ids, token_type_ids, None,
                          eps=layer_norm_eps, tile=128)
    out = jax.block_until_ready(out)

    position_ids = jnp.broadcast_to(jnp.arange(S, dtype=jnp.int32)[None, :], (B, S))
    ref = _reference(input_ids, token_type_ids, position_ids, params,
                     eps=layer_norm_eps)
    assert out.shape == (B, S, hidden_size)
    assert jnp.allclose(out, ref, atol=1e-5, rtol=1e-5), "mismatch vs JAX reference"

    print("KERNEL_OK")
</pallas_src>

<mosaic_0001>
module attributes {stable_mosaic.version = 11 : i64} {
  func.func @_bert_embeddings_kernel(%arg0: i32, %arg1: memref<256xi32, #tpu.memory_space<smem>>, %arg2: memref<128x1xi32, #tpu.memory_space<vmem>>, %arg3: memref<128x1xi32, #tpu.memory_space<vmem>>, %arg4: memref<512x128xf32, #tpu.memory_space<any>>, %arg5: memref<128x128xf32, #tpu.memory_space<vmem>>, %arg6: memref<2x128xf32, #tpu.memory_space<vmem>>, %arg7: memref<1x128xf32, #tpu.memory_space<vmem>>, %arg8: memref<1x128xf32, #tpu.memory_space<vmem>>, %arg9: memref<128x128xf32, #tpu.memory_space<vmem>>, %arg10: memref<128x128xf32, #tpu.memory_space<vmem>>, %arg11: memref<1x!tpu.dma_semaphore, #tpu.memory_space<semaphore_mem>>) attributes {dimension_semantics = [#tpu.dimension_semantics<parallel>], iteration_bounds = array<i64: 2>, scalar_prefetch = 1 : i64, scratch_operands = 2 : i64, tpu.core_type = #tpu.core_type<tc>, window_params = [{transform_indices = @transform_0, window_bounds = array<i64: 128, 1>}, {transform_indices = @transform_1, window_bounds = array<i64: 128, 1>}, {}, {pipeline_mode = #tpu.pipeline_mode<synchronous>, transform_indices = @transform_3, window_bounds = array<i64: 128, 128>}, {pipeline_mode = #tpu.pipeline_mode<synchronous>, transform_indices = @transform_4, window_bounds = array<i64: 2, 128>}, {pipeline_mode = #tpu.pipeline_mode<synchronous>, transform_indices = @transform_5, window_bounds = array<i64: 1, 128>}, {pipeline_mode = #tpu.pipeline_mode<synchronous>, transform_indices = @transform_6, window_bounds = array<i64: 1, 128>}, {transform_indices = @transform_7, window_bounds = array<i64: 128, 128>}]} {
    %c128_i32 = arith.constant 128 : i32
    %0 = arith.muli %arg0, %c128_i32 : i32
    %c0_i32 = arith.constant 0 : i32
    %c128_i32_0 = arith.constant 128 : i32
    %1 = arith.addi %c0_i32, %c128_i32_0 : i32
    %c1_i32 = arith.constant 1 : i32
    scf.for %arg12 = %c0_i32 to %1 step %c1_i32  : i32 {
      %c1_i32_31 = arith.constant 1 : i32
      %66 = arith.muli %arg12, %c1_i32_31 : i32
      %c0_i32_32 = arith.constant 0 : i32
      %67 = arith.addi %c0_i32_32, %66 : i32
      %68 = arith.addi %0, %67 : i32
      %69 = arith.index_cast %68 : i32 to index
      %70 = memref.load %arg1[%69] : memref<256xi32, #tpu.memory_space<smem>>
      %c0_i32_33 = arith.constant 0 : i32
      %c0_i32_34 = arith.constant 0 : i32
      %71 = tpu.memref_slice %arg4[%70, %c0_i32_34] : memref<512x128xf32, #tpu.memory_space<any>> -> memref<1x128xf32, #tpu.memory_space<any>>
      %c0_i32_35 = arith.constant 0 : i32
      %72 = tpu.memref_slice %arg10[%67, %c0_i32_35] : memref<128x128xf32, #tpu.memory_space<vmem>> -> memref<1x128xf32, #tpu.memory_space<vmem>>
      %73 = tpu.memref_slice %arg11[%c0_i32_33] : memref<1x!tpu.dma_semaphore, #tpu.memory_space<semaphore_mem>> -> memref<1x!tpu.dma_semaphore, #tpu.memory_space<semaphore_mem>>
      %74 = tpu.memref_squeeze %73 : memref<1x!tpu.dma_semaphore, #tpu.memory_space<semaphore_mem>> -> memref<!tpu.dma_semaphore, #tpu.memory_space<semaphore_mem>>
      tpu.enqueue_dma source(%71 : memref<1x128xf32, #tpu.memory_space<any>>) target(%72 : memref<1x128xf32, #tpu.memory_space<vmem>>) target_semaphore(%74 : memref<!tpu.dma_semaphore, #tpu.memory_space<semaphore_mem>>)
    }
    %c128_i32_1 = arith.constant 128 : i32
    %c0 = arith.constant 0 : index
    %c0_2 = arith.constant 0 : index
    %2 = vector.load %arg2[%c0, %c0_2] : memref<128x1xi32, #tpu.memory_space<vmem>>, vector<128x1xi32>
    %3 = tpu.iota {dimensions = array<i32: 1>} : vector<128x128xi32>
    %4 = vector.broadcast %2 : vector<128x1xi32> to vector<128x128xi32>
    %5 = arith.cmpi eq, %4, %3 : vector<128x128xi32>
    %6 = arith.extui %5 : vector<128x128xi1> to vector<128x128xi32>
    %7 = arith.sitofp %6 : vector<128x128xi32> to vector<128x128xf32>
    %c0_3 = arith.constant 0 : index
    %c0_4 = arith.constant 0 : index
    %8 = vector.load %arg5[%c0_3, %c0_4] : memref<128x128xf32, #tpu.memory_space<vmem>>, vector<128x128xf32>
    %cst = arith.constant dense<0.000000e+00> : vector<128x128xf32>
    %9 = tpu.matmul %7, %8, %cst {dimension_numbers = #tpu.dot_dimension_numbers<[1], [0], [0], [1], [0, 0, 1, 1], [], []>} : vector<128x128xf32>, vector<128x128xf32>, vector<128x128xf32> -> vector<128x128xf32>
    %c0_5 = arith.constant 0 : index
    %c0_6 = arith.constant 0 : index
    %10 = vector.load %arg3[%c0_5, %c0_6] : memref<128x1xi32, #tpu.memory_space<vmem>>, vector<128x1xi32>
    %cst_7 = arith.constant 0.000000e+00 : f32
    %11 = vector.broadcast %cst_7 : f32 to vector<128x128xf32>
    %c0_8 = arith.constant 0 : index
    %c0_9 = arith.constant 0 : index
    %12 = vector.load %arg6[%c0_8, %c0_9] : memref<2x128xf32, #tpu.memory_space<vmem>>, vector<1x128xf32>
    %13 = vector.shape_cast %12 : vector<1x128xf32> to vector<128xf32>
    %14 = vector.shape_cast %13 : vector<128xf32> to vector<1x128xf32>
    %c0_i32_10 = arith.constant 0 : i32
    %15 = vector.broadcast %c0_i32_10 : i32 to vector<128x1xi32>
    %16 = arith.cmpi eq, %10, %15 : vector<128x1xi32>
    %cst_11 = arith.constant 1.000000e+00 : f32
    %cst_12 = arith.constant 0.000000e+00 : f32
    %17 = vector.broadcast %cst_11 : f32 to vector<128x1xf32>
    %18 = vector.broadcast %cst_12 : f32 to vector<128x1xf32>
    %19 = arith.select %16, %17, %18 : vector<128x1xi1>, vector<128x1xf32>
    %20 = vector.broadcast %19 : vector<128x1xf32> to vector<128x128xf32>
    %21 = vector.broadcast %14 : vector<1x128xf32> to vector<128x128xf32>
    %22 = arith.mulf %20, %21 : vector<128x128xf32>
    %23 = arith.addf %11, %22 : vector<128x128xf32>
    %c1 = arith.constant 1 : index
    %c0_13 = arith.constant 0 : index
    %24 = vector.load %arg6[%c1, %c0_13] : memref<2x128xf32, #tpu.memory_space<vmem>>, vector<1x128xf32>
    %25 = vector.shape_cast %24 : vector<1x128xf32> to vector<128xf32>
    %26 = vector.shape_cast %25 : vector<128xf32> to vector<1x128xf32>
    %c1_i32_14 = arith.constant 1 : i32
    %27 = vector.broadcast %c1_i32_14 : i32 to vector<128x1xi32>
    %28 = arith.cmpi eq, %10, %27 : vector<128x1xi32>
    %cst_15 = arith.constant 1.000000e+00 : f32
    %cst_16 = arith.constant 0.000000e+00 : f32
    %29 = vector.broadcast %cst_15 : f32 to vector<128x1xf32>
    %30 = vector.broadcast %cst_16 : f32 to vector<128x1xf32>
    %31 = arith.select %28, %29, %30 : vector<128x1xi1>, vector<128x1xf32>
    %32 = vector.broadcast %31 : vector<128x1xf32> to vector<128x128xf32>
    %33 = vector.broadcast %26 : vector<1x128xf32> to vector<128x128xf32>
    %34 = arith.mulf %32, %33 : vector<128x128xf32>
    %35 = arith.addf %23, %34 : vector<128x128xf32>
    %c0_i32_17 = arith.constant 0 : i32
    %36 = tpu.memref_slice %arg11[%c0_i32_17] : memref<1x!tpu.dma_semaphore, #tpu.memory_space<semaphore_mem>> -> memref<1x!tpu.dma_semaphore, #tpu.memory_space<semaphore_mem>>
    %37 = tpu.memref_squeeze %36 : memref<1x!tpu.dma_semaphore, #tpu.memory_space<semaphore_mem>> -> memref<!tpu.dma_semaphore, #tpu.memory_space<semaphore_mem>>
    tpu.wait_dma2 semaphore(%37 : memref<!tpu.dma_semaphore, #tpu.memory_space<semaphore_mem>>) src(%arg10 : memref<128x128xf32, #tpu.memory_space<vmem>>) dst(%arg10 : memref<128x128xf32, #tpu.memory_space<vmem>>)
    %c0_18 = arith.constant 0 : index
    %c0_19 = arith.constant 0 : index
    %38 = vector.load %arg10[%c0_18, %c0_19] : memref<128x128xf32, #tpu.memory_space<vmem>>, vector<128x128xf32>
    %39 = arith.addf %38, %9 : vector<128x128xf32>
    %40 = arith.addf %39, %35 : vector<128x128xf32>
    %cst_20 = arith.constant dense<0.000000e+00> : vector<128xf32>
    %41 = vector.multi_reduction <add>, %40, %cst_20 [1] : vector<128x128xf32> to vector<128xf32>
    %42 = vector.shape_cast %41 : vector<128xf32> to vector<128x1xf32>
    %cst_21 = arith.constant 1.280000e+02 : f32
    %43 = vector.broadcast %cst_21 : f32 to vector<128x1xf32>
    %44 = arith.divf %42, %43 : vector<128x1xf32>
    %45 = vector.broadcast %44 : vector<128x1xf32> to vector<128x128xf32>
    %46 = arith.subf %40, %45 : vector<128x128xf32>
    %47 = arith.mulf %46, %46 : vector<128x128xf32>
    %cst_22 = arith.constant dense<0.000000e+00> : vector<128xf32>
    %48 = vector.multi_reduction <add>, %47, %cst_22 [1] : vector<128x128xf32> to vector<128xf32>
    %49 = vector.shape_cast %48 : vector<128xf32> to vector<128x1xf32>
    %cst_23 = arith.constant 1.280000e+02 : f32
    %50 = vector.broadcast %cst_23 : f32 to vector<128x1xf32>
    %51 = arith.divf %49, %50 : vector<128x1xf32>
    %52 = vector.broadcast %44 : vector<128x1xf32> to vector<128x128xf32>
    %53 = arith.subf %40, %52 : vector<128x128xf32>
    %cst_24 = arith.constant 9.99999996E-13 : f32
    %54 = vector.broadcast %cst_24 : f32 to vector<128x1xf32>
    %55 = arith.addf %51, %54 : vector<128x1xf32>
    %56 = math.rsqrt %55 : vector<128x1xf32>
    %57 = vector.broadcast %56 : vector<128x1xf32> to vector<128x128xf32>
    %58 = arith.mulf %53, %57 : vector<128x128xf32>
    %c0_25 = arith.constant 0 : index
    %c0_26 = arith.constant 0 : index
    %59 = vector.load %arg7[%c0_25, %c0_26] : memref<1x128xf32, #tpu.memory_space<vmem>>, vector<1x128xf32>
    %60 = vector.broadcast %59 : vector<1x128xf32> to vector<128x128xf32>
    %61 = arith.mulf %58, %60 : vector<128x128xf32>
    %c0_27 = arith.constant 0 : index
    %c0_28 = arith.constant 0 : index
    %62 = vector.load %arg8[%c0_27, %c0_28] : memref<1x128xf32, #tpu.memory_space<vmem>>, vector<1x128xf32>
    %63 = vector.broadcast %62 : vector<1x128xf32> to vector<128x128xf32>
    %64 = arith.addf %61, %63 : vector<128x128xf32>
    %c0_29 = arith.constant 0 : index
    %c0_30 = arith.constant 0 : index
    %65 = vector.load %arg9[%c0_29, %c0_30] : memref<128x128xf32, #tpu.memory_space<vmem>>, vector<128x128xf32>
    tpu.vector_store %arg9[%c0_29, %c0_30], %64 {strides = array<i32>} : memref<128x128xf32, #tpu.memory_space<vmem>>, vector<128x128xf32>,
    return
  }
  func.func @transform_0(%arg0: i32, %arg1: memref<256xi32, #tpu.memory_space<smem>>) -> (i32, i32) {
    %c0_i32 = arith.constant 0 : i32
    %c0_i32_0 = arith.constant 0 : i32
    return %arg0, %c0_i32 : i32, i32
  }
  func.func @transform_1(%arg0: i32, %arg1: memref<256xi32, #tpu.memory_space<smem>>) -> (i32, i32) {
    %c0_i32 = arith.constant 0 : i32
    %c0_i32_0 = arith.constant 0 : i32
    return %arg0, %c0_i32 : i32, i32
  }
  func.func @transform_3(%arg0: i32, %arg1: memref<256xi32, #tpu.memory_space<smem>>) -> (i32, i32) {
    %c0_i32 = arith.constant 0 : i32
    %c0_i32_0 = arith.constant 0 : i32
    %c0_i32_1 = arith.constant 0 : i32
    return %c0_i32, %c0_i32_0 : i32, i32
  }
  func.func @transform_4(%arg0: i32, %arg1: memref<256xi32, #tpu.memory_space<smem>>) -> (i32, i32) {
    %c0_i32 = arith.constant 0 : i32
    %c0_i32_0 = arith.constant 0 : i32
    %c0_i32_1 = arith.constant 0 : i32
    return %c0_i32, %c0_i32_0 : i32, i32
  }
  func.func @transform_5(%arg0: i32, %arg1: memref<256xi32, #tpu.memory_space<smem>>) -> (i32, i32) {
    %c0_i32 = arith.constant 0 : i32
    %c0_i32_0 = arith.constant 0 : i32
    %c0_i32_1 = arith.constant 0 : i32
    return %c0_i32, %c0_i32_0 : i32, i32
  }
  func.func @transform_6(%arg0: i32, %arg1: memref<256xi32, #tpu.memory_space<smem>>) -> (i32, i32) {
    %c0_i32 = arith.constant 0 : i32
    %c0_i32_0 = arith.constant 0 : i32
    %c0_i32_1 = arith.constant 0 : i32
    return %c0_i32, %c0_i32_0 : i32, i32
  }
  func.func @transform_7(%arg0: i32, %arg1: memref<256xi32, #tpu.memory_space<smem>>) -> (i32, i32) {
    %c0_i32 = arith.constant 0 : i32
    %c0_i32_0 = arith.constant 0 : i32
    return %arg0, %c0_i32 : i32, i32
  }
}

</mosaic_0001>

<bundles_post_ra>
// kernel: tpu_custom_call.1
= control target key start
LH: loop header
LB: loop body
LE: loop exit
PB: predicated region body
PF: predicated region fallthrough
CT: control target
= control target key end

     0   :  { %s2455_s0 = inlined_call_operand.vmem [shape: s32[256], index: 0, kind: input, shape index: {}]   ;;  %s2456_s1 = inlined_call_operand.vmem [shape: s32[256,1], index: 1, kind: input, shape index: {}]   ;;  %s2457_s2 = inlined_call_operand.vmem [shape: s32[256,1], index: 2, kind: input, shape index: {}]   ;;  %s2458_s3 = inlined_call_operand.vmem [shape: f32[512,128], index: 3, kind: input, shape index: {}]   ;;  %s2459_s4 = inlined_call_operand.hbm [shape: f32[128,128], index: 4, kind: input, shape index: {}]   ;;  %s2460_s5 = inlined_call_operand.vmem [shape: f32[2,128], index: 5, kind: input, shape index: {}]   ;;  %s2461_s6 = inlined_call_operand.vmem [shape: f32[1,128], index: 6, kind: input, shape index: {}]   ;;  %s2462_s7 = inlined_call_operand.vmem [shape: f32[1,128], index: 7, kind: input, shape index: {}]   ;;  %s2463_s8 = inlined_call_operand.hbm [shape: f32[256,128], index: 8, kind: output, shape index: {}]  }
   0x1   :  { %2465 = sst [smem:[#allocation16_spill]] %s2459_s4  ;;  %s13_s29 = sshll.u32 %s2455_s0, 4  ;;  %s14_s29 = int_to_ptr.vmem [resolvable:$true] %s13_s29 }
   0x2   :  { %s1712_s30 = scalar_lea.vmem %s14_s29, 32  ;;  %p1717_p1 = scmp.lt.s32.totalorder %s14_s29, %s14_s29 }
   0x3   :  { %p1713_p0 = scmp.ne.s32.totalorder %s14_s29, %s1712_s30  ;;  %p1718_p2 = scmp.lt.s32.totalorder %s1712_s30, %s1712_s30 }
   0x5   :  { %p1719_p3 = por %p1718_p2, %p1717_p1 }
   0x7   :  { %p1720_p4 = pnand %p1719_p3, %p1713_p0 }
   0x9   :  { %1723 = shalt.err (!%p1720_p4)  }
   0xa   :  { %s1828_s9 = smov [#allocation5]  }
   0xb   :  { %16 = dma.vmem_to_smem %s14_s29, 32, %s1828_s9, [#allocation4] }
   0xc   :  { %1796 = dma.done.wait [#allocation4], 32 }
   0xd   :  { %1797 = vsyncadd [#allocation4], 4294967264 }
   0xe   :  { %18 = sfence }
   0xf   :  { %19 = vsyncpa [#allocation7], 0 }
  0x10   :  { %20 = vsyncpa [#allocation8], 0 }
  0x11   :  { %22 = vsyncpa [#allocation8 + $0x1], 0  ;;  %s1886_s10 = smov 0   ;;  %s1888_s11 = smov 0  }
  0x12   :  { %s1890_s0 = smov 0   ;;  %s1892_s12 = smov 0  }
  0x13 LB: > { %s1907_s13 = sadd.s32 4294967295, %s1822_s12   ;;  %s1357_s14 = sadd.s32 4294967294, %s1822_s12   ;;  %s1822_s12 = sphi %s1892_s12, %s2477_s12   ;;  %s1818_s0 = sphi %s1890_s0, %s2476_s0   ;;  %s1814_s11 = sphi %s1888_s11, %s2475_s11   ;;  %s1810_s10 = sphi %s1886_s10, %s2474_s10  }
  0x14   : > { %s1911_s15 = sadd.s32 1, %s1822_s12   ;;  %s171_s16 = sadd.s32 1, %s1818_s0 }
  0x15   : > { %s168_s17 = ssub.s32 %s1822_s12, %s1911_s15  ;;  %p181_p5 = scmp.ne.s32.totalorder %s1818_s0, %s1814_s11 }
  0x16   : > { %p169_p6 = scmp.eq.s32.totalorder %s168_s17, 0  ;;  %p182_p7 = scmp.eq.s32.totalorder %s1907_s13, 1 }
  0x17   : > { %p187_p8 = scmp.ne.s32.totalorder %s1814_s11, %s1810_s10  ;;  %p188_p9 = scmp.eq.s32.totalorder %s1357_s14, 1 }
  0x18   : > { %s1922_s18 = scalar_select %p169_p6, %s1818_s0, %s171_s16  }
  0x19   : > { %p1924_p10 = por %p182_p7, %p181_p5  ;;  %p1928_p11 = por %p188_p9, %p187_p8 }
  0x1a   : > { %2466 = sst [smem:[#allocation15_spill]] %s1922_s18  ;;  %p1358_p12 = scmp.ge.s32.totalorder %s1822_s12, 1 }
  0x1b   : > { %s2468_s20 = scalar_select %p1928_p11, 1, 0 }
  0x1c   : > { %p195_p13 = scmp.lt.s32.totalorder %s1822_s12, 3  ;;  %p1546_p0 = scmp.eq.s32.totalorder %s1907_s13, 0 }
  0x1d   : > { %s1829_s22 = smov [#allocation6]  }
  0x1e   : > { %p1935_p1 = pnand %p1358_p12, %p195_p13  ;;  %s207_s23 = sshll.u32 %s1829_s22, 4  ;;  %s208_s23 = int_to_ptr.vmem [resolvable:$true] %s207_s23 }
  0x1f   : > { %s1735_s24 = scalar_lea.vmem %s208_s23, 2048  ;;  %p1743_p8 = scmp.lt.s32.totalorder %s208_s23, %s208_s23 }
  0x20   : > { %p1538_p2 = pneg %p1935_p1  ;;  %p1736_p5 = scmp.ne.s32.totalorder %s208_s23, %s1735_s24 }
  0x21   : > { %p1744_p9 = scmp.lt.s32.totalorder %s1735_s24, %s1735_s24 }
  0x22   : > { %p1539_p3 = pnand %p1546_p0, %p1538_p2 }
  0x23   : > { %p1745_p11 = por %p1744_p9, %p1743_p8 }
  0x24   : > { %p1726_p4 = pneg %p1539_p3 }
  0x26   : > { %p1738_p6 = pnand %p1736_p5, %p1726_p4 }
  0x28   : > { %p1739_p7 = pneg %p1738_p6 }
  0x2a   : > { %p1746_p12 = pnand %p1745_p11, %p1739_p7 }
  0x2c   : > { %1749 = shalt.err (!%p1746_p12)
}
  0x2d   : > { %s1830_s25 = smov 128   ;;  %s1831_s26 = smov 8  }
  0x2e   : > { %s2470_s4 = sld [smem:[#allocation16_spill]] }
  0x30   : > { %250 = sbr.rel (%p1935_p1) target bundleno = 780 (0x30c), region = 44 }
  0x34   : > { %1541 = dma.hbm_to_vmem [thread:$0]  (!%p1539_p3), %s2470_s4, 2048, %s208_s23, [#allocation7], %s1830_s25, %s1830_s25, %s1831_s26  }
  0x35   : > { %1799 = dma.done.wait (%p1546_p0), [#allocation7], 2048  }
  0x36   : > { %1801 = vsyncadd (%p1546_p0), [#allocation7], 4294965248  ;;  %s2464_s29 = sand.u32 1, %s1814_s11   ;;  %s1364_s30 = sshll.u32 %s1907_s13, 4 }
  0x37   : > { %s1363_s9 = sshll.u32 %s2464_s29, 7  ;;  %p286_p11 = scmp.lt.s32.totalorder %s1364_s30, 31 }
  0x38   : > { %s1368_s14 = sshll.u32 %s1907_s13, 7  ;;  %s1967_s26 = scalar_lea.vmem [#allocation9], %s1363_s9 }
  0x39   : > { %s2479_s30 = smov (!%p286_p11, %s1364_s30), 31  ;;  %s1824_s27 = smov 0  }
  0x3a   : > { %s1365_s16 = sshll.u32 %s2479_s30, 3 }
  0x3b   : > { %s1960_s22 = scalar_lea.vmem %s2456_s1, %s1365_s16  ;;  %s1965_s25 = scalar_lea.vmem %s2457_s2, %s1365_s16 }
  0x3c LB: >> { %s305_s28 = sadd.s32 %s1826_s27, %s1368_s14  ;;  %s308_s17 = scalar_lea.vmem [#allocation2], %s1826_s27  ;;  %s1826_s27 = sphi %s1824_s27, %s304_s27  }
  0x3d   : >> { %s306_s29 = sld [smem:[#allocation5 + %s305_s28]] }
  0x43   : >> { %s307_s18 = scalar_lea.vmem %s2458_s3, %s306_s29 }
  0x44   : >> { %v327_v0 = vld [vmem:[%s307_s18] sm:$0x1] }
  0x45   : >> { %328 = vst [vmem:[%s308_s17] sm:$0x1] %v327_v0 }
  0x46   : >> { %354 = vsyncadd [#allocation3], 16  ;;  %s304_s27 = sadd.s32 1, %s1826_s27  }
  0x47   : >> { %p301_p13 = scmp.ge.s32.totalorder %s304_s27, 128  }
  0x48   : > { %v356_v1 = vld [vmem:[%s1960_s22 + $0x8] sm:$0xff] (%p301_p13)  ;;  %v355_v2 = vld [vmem:[%s1960_s22] sm:$0xff] (%p301_p13)  ;;  %v1832_v3 = vmov (%p301_p13), 0   ;;  %v365_v6 = vld [vmem:[%s1960_s22 + $0x50] sm:$0xff] (%p301_p13)  ;;  %v1833_v33 = vmov (%p301_p13), 0.0  }
  0x49   : > { %303 = sbr.rel (!%p301_p13) target bundleno = 60 (0x3c), region = 136  ;;  %1599 = vset.pattern.permute.xlu1 (%p301_p13), %v1832_v3  ;;  %1598 = vset.pattern.permute.xlu0 (%p301_p13), %v1832_v3  ;;  %v364_v4 = vld [vmem:[%s1960_s22 + $0x48] sm:$0xff] (%p301_p13)  ;;  %v363_v5 = vld [vmem:[%s1960_s22 + $0x40] sm:$0xff] (%p301_p13)  ;;  %v357_v7 = vld [vmem:[%s1960_s22 + $0x10] sm:$0xff] (%p301_p13) }
  0x4a   : > { %377 = vperm.xlu1 (%p301_p13), %1599, %v356_v1   ;;  %374 = vperm.xlu0 (%p301_p13), %1598, %v355_v2   ;;  %v366_v8 = vld [vmem:[%s1960_s22 + $0x58] sm:$0xff] (%p301_p13)  ;;  %v483_v11 = vld [vmem:[#allocation6 + $0x70] sm:$0xff] (%p301_p13)  ;;  %v482_v12 = vld [vmem:[#allocation6 + $0x68] sm:$0xff] (%p301_p13) }
  0x4b   : > { %v358_v9 = vld [vmem:[%s1960_s22 + $0x18] sm:$0xff] (%p301_p13)  ;;  %v367_v13 = vld [vmem:[%s1960_s22 + $0x60] sm:$0xff] (%p301_p13)  ;;  %v368_v16 = vld [vmem:[%s1960_s22 + $0x68] sm:$0xff] (%p301_p13) }
  0x4c   : > { %v484_v10 = vld [vmem:[#allocation6 + $0x78] sm:$0xff] (%p301_p13)  ;;  %v359_v14 = vld [vmem:[%s1960_s22 + $0x20] sm:$0xff] (%p301_p13)  ;;  %v360_v17 = vld [vmem:[%s1960_s22 + $0x28] sm:$0xff] (%p301_p13) }
  0x4d   : > { %1444 = vmatprep.subr.mxu0 (%p301_p13), %v484_v10  ;;  %1500 = vmatprep.subr.mxu1 (%p301_p13), %v484_v10  ;;  %v481_v15 = vld [vmem:[#allocation6 + $0x60] sm:$0xff] (%p301_p13)  ;;  %v1985_v18 = vld [vmem:[%s1965_s25 + $0x10] sm:$0xff] (%p301_p13)  ;;  %v480_v19 = vld [vmem:[#allocation6 + $0x58] sm:$0xff] (%p301_p13) }
  0x4e   : > { %401 = vperm.xlu1 %1599, %v364_v4   ;;  %398 = vperm.xlu0 %1598, %v363_v5   ;;  %v1988_v20 = vld [vmem:[%s1965_s25 + $0x18] sm:$0xff]  ;;  %v1991_v21 = vld [vmem:[%s1965_s25] sm:$0xff]  ;;  %v1994_v22 = vld [vmem:[%s1965_s25 + $0x8] sm:$0xff]  ;;  %vm649_vm0 = vcmp.eq.s32.totalorder %v1985_v18, 0 }
  0x4f   : > { %1445 = vmatpush3.msra.mxu0 %v484_v10  ;;  %1516 = vmatpush3.msra.mxu1 %v484_v10  ;;  %v479_v23 = vld [vmem:[#allocation6 + $0x50] sm:$0xff]  ;;  %vm650_vm1 = vcmp.eq.s32.totalorder %v1988_v20, 0  ;;  %vm647_vm2 = vcmp.eq.s32.totalorder %v1991_v21, 0  ;;  %vm648_vm3 = vcmp.eq.s32.totalorder %v1994_v22, 0  ;;  %v2006_v27 = vld [vmem:[%s1965_s25 + $0x38] sm:$0xff]  ;;  %v2009_v28 = vld [vmem:[%s1965_s25 + $0x20] sm:$0xff] }
  0x50   : > { %1446 = vmatprep.subr.mxu0 %v483_v11  ;;  %1501 = vmatprep.subr.mxu1 %v483_v11  ;;  %v369_v24 = vld [vmem:[%s1960_s22 + $0x70] sm:$0xff]  ;;  %v2012_v29 = vld [vmem:[%s1965_s25 + $0x28] sm:$0xff]  ;;  %v370_v31 = vld [vmem:[%s1960_s22 + $0x78] sm:$0xff]  ;;  %v665_v34 = vsel %vm649_vm0, 1.0, %v1833_v33  ;;  %v666_v35 = vsel %vm650_vm1, 1.0, %v1833_v33  ;;  %v663_v36 = vsel %vm647_vm2, 1.0, %v1833_v33 }
  0x51   : > { %1447 = vmatpush3.msra.mxu0 %v483_v11  ;;  %1517 = vmatpush3.msra.mxu1 %v483_v11  ;;  %v361_v25 = vld [vmem:[%s1960_s22 + $0x30] sm:$0xff]  ;;  %v478_v30 = vld [vmem:[#allocation6 + $0x48] sm:$0xff]  ;;  %v362_v32 = vld [vmem:[%s1960_s22 + $0x38] sm:$0xff]  ;;  %v664_v37 = vsel %vm648_vm3, 1.0, %v1833_v33  ;;  %vm654_vm5 = vcmp.eq.s32.totalorder %v2006_v27, 0  ;;  %vm651_vm6 = vcmp.eq.s32.totalorder %v2009_v28, 0  ;;  %v1605_v43 = vpack.i.bf16 %v666_v35, %v665_v34 }
  0x52   : > { %404 = vperm.xlu1 %1599, %v365_v6   ;;  %380 = vperm.xlu0 %1598, %v357_v7   ;;  %v2003_v26 = vld [vmem:[%s1965_s25 + $0x30] sm:$0xff]  ;;  %vm652_vm7 = vcmp.eq.s32.totalorder %v2012_v29, 0  ;;  %v477_v39 = vld [vmem:[#allocation6 + $0x40] sm:$0xff]  ;;  %v2036_v40 = vld [vmem:[%s1965_s25 + $0x58] sm:$0xff]  ;;  %v1600_v44 = vpack.i.bf16 %v664_v37, %v663_v36  ;;  %v670_v47 = vsel %vm654_vm5, 1.0, %v1833_v33  ;;  %v667_v48 = vsel %vm651_vm6, 1.0, %v1833_v33 }
  0x53   : > { %1448 = vmatprep.subr.mxu0 %v482_v12  ;;  %1502 = vmatprep.subr.mxu1 %v482_v12  ;;  %vm653_vm4 = vcmp.eq.s32.totalorder %v2003_v26, 0  ;;  %v2033_v38 = vld [vmem:[%s1965_s25 + $0x50] sm:$0xff]  ;;  %v2039_v41 = vld [vmem:[%s1965_s25 + $0x40] sm:$0xff]  ;;  %v2042_v42 = vld [vmem:[%s1965_s25 + $0x48] sm:$0xff]  ;;  %v668_v49 = vsel %vm652_vm7, 1.0, %v1833_v33  ;;  %vm658_vm9 = vcmp.eq.s32.totalorder %v2036_v40, 0  ;;  %v371_v36 = vlaneseq }
  0x54   : > { %1449 = vmatpush3.msra.mxu0 %v482_v12  ;;  %1518 = vmatpush3.msra.mxu1 %v482_v12  ;;  %v476_v45 = vld [vmem:[#allocation6 + $0x38] sm:$0xff]  ;;  %v669_v46 = vsel %vm653_vm4, 1.0, %v1833_v33  ;;  %vm657_vm8 = vcmp.eq.s32.totalorder %v2033_v38, 0  ;;  %vm655_vm10 = vcmp.eq.s32.totalorder %v2039_v41, 0  ;;  %vm656_vm11 = vcmp.eq.s32.totalorder %v2042_v42, 0  ;;  %v2061_v50 = vld [vmem:[%s1965_s25 + $0x70] sm:$0xff] }
  0x55   : > { %1450 = vmatprep.subr.mxu0 %v481_v15  ;;  %1503 = vmatprep.subr.mxu1 %v481_v15  ;;  %v2064_v51 = vld [vmem:[%s1965_s25 + $0x78] sm:$0xff]  ;;  %v2067_v52 = vld [vmem:[%s1965_s25 + $0x60] sm:$0xff]  ;;  %v2070_v53 = vld [vmem:[%s1965_s25 + $0x68] sm:$0xff]  ;;  %v1615_v55 = vpack.i.bf16 %v670_v47, %v669_v46  ;;  %v1610_v56 = vpack.i.bf16 %v668_v49, %v667_v48  ;;  %v673_v57 = vsel %vm657_vm8, 1.0, %v1833_v33  ;;  %v674_v58 = vsel %vm658_vm9, 1.0, %v1833_v33 }
  0x56   : > { %407 = vperm.xlu1 %1599, %v366_v8   ;;  %383 = vperm.xlu0 %1598, %v358_v9   ;;  %v475_v54 = vld [vmem:[#allocation6 + $0x30] sm:$0xff]  ;;  %v671_v59 = vsel %vm655_vm10, 1.0, %v1833_v33  ;;  %v672_v60 = vsel %vm656_vm11, 1.0, %v1833_v33  ;;  %vm661_vm12 = vcmp.eq.s32.totalorder %v2061_v50, 0  ;;  %vm662_vm13 = vcmp.eq.s32.totalorder %v2064_v51, 0  ;;  %v474_v61 = vld [vmem:[#allocation6 + $0x28] sm:$0xff] }
  0x57   : > { %1451 = vmatpush3.msra.mxu0 %v481_v15  ;;  %1519 = vmatpush3.msra.mxu1 %v481_v15  ;;  %vm659_vm14 = vcmp.eq.s32.totalorder %v2067_v52, 0  ;;  %vm660_vm15 = vcmp.eq.s32.totalorder %v2070_v53, 0  ;;  %v1625_v62 = vpack.i.bf16 %v674_v58, %v673_v57  ;;  %v1620_v63 = vpack.i.bf16 %v672_v60, %v671_v59  ;;  %v473_v0 = vld [vmem:[#allocation6 + $0x20] sm:$0xff]  ;;  %v472_v5 = vld [vmem:[#allocation6 + $0x18] sm:$0xff]  ;;  %v471_v12 = vld [vmem:[#allocation6 + $0x10] sm:$0xff] }
  0x58   : > { %1452 = vmatprep.subr.mxu0 %v480_v19  ;;  %1504 = vmatprep.subr.mxu1 %v480_v19  ;;  %v677_v1 = vsel %vm661_vm12, 1.0, %v1833_v33  ;;  %v678_v2 = vsel %vm662_vm13, 1.0, %v1833_v33  ;;  %v675_v3 = vsel %vm659_vm14, 1.0, %v1833_v33  ;;  %v676_v4 = vsel %vm660_vm15, 1.0, %v1833_v33  ;;  %v470_v15 = vld [vmem:[#allocation6 + $0x8] sm:$0xff] }
  0x59   : > { %1453 = vmatpush3.msra.mxu0 %v480_v19  ;;  %1520 = vmatpush3.msra.mxu1 %v480_v19  ;;  %vm798_vm0 = vcmp.eq.s32.totalorder %v1985_v18, 1  ;;  %vm799_vm1 = vcmp.eq.s32.totalorder %v1988_v20, 1  ;;  %vm796_vm2 = vcmp.eq.s32.totalorder %v1991_v21, 1  ;;  %vm797_vm3 = vcmp.eq.s32.totalorder %v1994_v22, 1  ;;  %v469_v20 = vld [vmem:[#allocation6] sm:$0xff] }
  0x5a   : > { %410 = vperm.xlu1 %1599, %v367_v13   ;;  %386 = vperm.xlu0 %1598, %v359_v14   ;;  %v1635_v6 = vpack.i.bf16 %v678_v2, %v677_v1  ;;  %v1630_v7 = vpack.i.bf16 %v676_v4, %v675_v3  ;;  %v814_v8 = vsel %vm798_vm0, 1.0, %v1833_v33  ;;  %v815_v9 = vsel %vm799_vm1, 1.0, %v1833_v33 }
  0x5b   : > { %1454 = vmatprep.subr.mxu0 %v479_v23  ;;  %1505 = vmatprep.subr.mxu1 %v479_v23  ;;  %v812_v10 = vsel %vm796_vm2, 1.0, %v1833_v33  ;;  %v813_v11 = vsel %vm797_vm3, 1.0, %v1833_v33  ;;  %vm802_vm4 = vcmp.eq.s32.totalorder %v2003_v26, 1  ;;  %vm803_vm5 = vcmp.eq.s32.totalorder %v2006_v27, 1 }
  0x5c   : > { %1455 = vmatpush3.msra.mxu0 %v479_v23  ;;  %1521 = vmatpush3.msra.mxu1 %v479_v23  ;;  %vm800_vm6 = vcmp.eq.s32.totalorder %v2009_v28, 1  ;;  %vm801_vm7 = vcmp.eq.s32.totalorder %v2012_v29, 1  ;;  %v1645_v13 = vpack.i.bf16 %v815_v9, %v814_v8  ;;  %v1640_v14 = vpack.i.bf16 %v813_v11, %v812_v10 }
  0x5d   : > { %1456 = vmatprep.subr.mxu0 %v478_v30  ;;  %1506 = vmatprep.subr.mxu1 %v478_v30  ;;  %v816_v18 = vsel %vm800_vm6, 1.0, %v1833_v33  ;;  %v817_v19 = vsel %vm801_vm7, 1.0, %v1833_v33  ;;  %vm806_vm8 = vcmp.eq.s32.totalorder %v2033_v38, 1  ;;  %vm807_vm9 = vcmp.eq.s32.totalorder %v2036_v40, 1 }
  0x5e   : > { %413 = vperm.xlu1 %1599, %v368_v16   ;;  %389 = vperm.xlu0 %1598, %v360_v17   ;;  %v818_v16 = vsel %vm802_vm4, 1.0, %v1833_v33  ;;  %v819_v17 = vsel %vm803_vm5, 1.0, %v1833_v33  ;;  %vm804_vm10 = vcmp.eq.s32.totalorder %v2039_v41, 1  ;;  %vm805_vm11 = vcmp.eq.s32.totalorder %v2042_v42, 1 }
  0x5f   : > { %1457 = vmatpush3.msra.mxu0 %v478_v30  ;;  %1522 = vmatpush3.msra.mxu1 %v478_v30  ;;  %v1655_v21 = vpack.i.bf16 %v819_v17, %v818_v16  ;;  %v1650_v22 = vpack.i.bf16 %v817_v19, %v816_v18  ;;  %v822_v23 = vsel %vm806_vm8, 1.0, %v1833_v33  ;;  %v821_v26 = vsel %vm805_vm11, 1.0, %v1833_v33 }
  0x60   : > { %1458 = vmatprep.subr.mxu0 %v477_v39  ;;  %1507 = vmatprep.subr.mxu1 %v477_v39  ;;  %vm810_vm12 = vcmp.eq.s32.totalorder %v2061_v50, 1  ;;  %vm811_vm13 = vcmp.eq.s32.totalorder %v2064_v51, 1  ;;  %vm808_vm14 = vcmp.eq.s32.totalorder %v2067_v52, 1  ;;  %vm809_vm15 = vcmp.eq.s32.totalorder %v2070_v53, 1 }
  0x61   : > { %1459 = vmatpush3.msra.mxu0 %v477_v39  ;;  %1523 = vmatpush3.msra.mxu1 %v477_v39  ;;  %v826_v29 = vsel %vm810_vm12, 1.0, %v1833_v33  ;;  %v827_v30 = vsel %vm811_vm13, 1.0, %v1833_v33  ;;  %v372_v37 = vand.u32 127, %v371_v36  ;;  %v1834_v40 = vmov 1.0  }
  0x62   : > { %416 = vperm.xlu1 %1599, %v369_v24   ;;  %392 = vperm.xlu0 %1598, %v361_v25   ;;  %v823_v24 = vsel %vm807_vm9, 1.0, %v1833_v33  ;;  %v820_v25 = vsel %vm804_vm10, 1.0, %v1833_v33  ;;  %v1675_v34 = vpack.i.bf16 %v827_v30, %v826_v29 }
  0x63   : > { %1460 = vmatprep.subr.mxu0 %v476_v45  ;;  %1508 = vmatprep.subr.mxu1 %v476_v45  ;;  %v1665_v27 = vpack.i.bf16 %v823_v24, %v822_v23  ;;  %v1660_v28 = vpack.i.bf16 %v821_v26, %v820_v25 }
  0x64   : > { %1461 = vmatpush3.msra.mxu0 %v476_v45  ;;  %1524 = vmatpush3.msra.mxu1 %v476_v45 }
  0x65   : > { %1462 = vmatprep.subr.mxu0 %v475_v54  ;;  %1509 = vmatprep.subr.mxu1 %v475_v54 }
  0x66   : > { %419 = vperm.xlu1 %1599, %v370_v31   ;;  %395 = vperm.xlu0 %1598, %v362_v32   ;;  %v824_v31 = vsel %vm808_vm14, 1.0, %v1833_v33  ;;  %v825_v32 = vsel %vm809_vm15, 1.0, %v1833_v33 }
  0x67   : > { %1463 = vmatpush3.msra.mxu0 %v475_v54  ;;  %1525 = vmatpush3.msra.mxu1 %v475_v54  ;;  %v1670_v35 = vpack.i.bf16 %v825_v32, %v824_v31 }
  0x68   : > { %1464 = vmatprep.subr.mxu0 %v474_v61  ;;  %1510 = vmatprep.subr.mxu1 %v474_v61 }
  0x69   : > { %1465 = vmatpush3.msra.mxu0 %v474_v61  ;;  %1526 = vmatpush3.msra.mxu1 %v474_v61 }
  0x6a   : > { %1606 = vperm.xlu1 %1599, %v1605_v43   ;;  %1601 = vperm.xlu0 %1598, %v1600_v44  }
  0x6b   : > { %1466 = vmatprep.subr.mxu0 %v473_v0  ;;  %1511 = vmatprep.subr.mxu1 %v473_v0 }
  0x6c   : > { %1467 = vmatpush3.msra.mxu0 %v473_v0  ;;  %1527 = vmatpush3.msra.mxu1 %v473_v0  ;;  %v2127_v0 = vld [vmem:[%s2460_s5] ss:$0 sm:$0xff] }
  0x6d   : > { %1468 = vmatprep.subr.mxu0 %v472_v5  ;;  %1512 = vmatprep.subr.mxu1 %v472_v5 }
  0x6e   : > { %1616 = vperm.xlu1 %1599, %v1615_v55   ;;  %1611 = vperm.xlu0 %1598, %v1610_v56  }
  0x6f   : > { %1469 = vmatpush3.msra.mxu0 %v472_v5  ;;  %1528 = vmatpush3.msra.mxu1 %v472_v5 }
  0x70   : > { %1470 = vmatprep.subr.mxu0 %v471_v12  ;;  %1513 = vmatprep.subr.mxu1 %v471_v12 }
  0x71   : > { %1471 = vmatpush3.msra.mxu0 %v471_v12  ;;  %1529 = vmatpush3.msra.mxu1 %v471_v12 }
  0x72   : > { %1626 = vperm.xlu1 %1599, %v1625_v62   ;;  %1621 = vperm.xlu0 %1598, %v1620_v63  }
  0x73   : > { %1472 = vmatprep.subr.mxu0 %v470_v15  ;;  %1514 = vmatprep.subr.mxu1 %v470_v15 }
  0x74   : > { %1473 = vmatpush3.msra.mxu0 %v470_v15  ;;  %1530 = vmatpush3.msra.mxu1 %v470_v15  ;;  %v2140_v15 = vld [vmem:[%s2460_s5 + $0x1] ss:$0 sm:$0xff] }
  0x75   : > { %1474 = vmatprep.subr.mxu0 %v469_v20  ;;  %1515 = vmatprep.subr.mxu1 %v469_v20 }
  0x76   : > { %1636 = vperm.xlu1 %1599, %v1635_v6   ;;  %1631 = vperm.xlu0 %1598, %v1630_v7  }
  0x77   : > { %1475 = vmatpush3.msra.mxu0 %v469_v20  ;;  %1531 = vmatpush3.msra.mxu1 %v469_v20 }
  0x7a   : > { %1646 = vperm.xlu1 %1599, %v1645_v13   ;;  %1641 = vperm.xlu0 %1598, %v1640_v14  }
  0x7e   : > { %1656 = vperm.xlu1 %1599, %v1655_v21   ;;  %1651 = vperm.xlu0 %1598, %v1650_v22  }
  0x82   : > { %1666 = vperm.xlu1 %1599, %v1665_v27   ;;  %1661 = vperm.xlu0 %1598, %v1660_v28  }
  0x86   : > { %1676 = vperm.xlu1 %1599, %v1675_v34   ;;  %1671 = vperm.xlu0 %1598, %v1670_v35  }
  0xc5   : > { %v378_v38 = vpop.permute.xlu1 %377  ;;  %v375_v39 = vpop.permute.xlu0 %374 }
  0xc6   : > { %vm422_vm0 = vcmp.eq.s32.totalorder %v378_v38, %v372_v37  ;;  %vm421_vm1 = vcmp.eq.s32.totalorder %v375_v39, %v372_v37 }
  0xc7   : > { %1476 = vmatprep.mubr.msk.f32.mxu0 %vm421_vm1, %v1834_v40 }
  0xc8   : > { %1477 = vmatmul.mubr.msk.f32.vlgmr.msra.gmra.mxu0 %vm422_vm0, %v1834_v40 }
  0xc9   : > { %v402_v41 = vpop.permute.xlu1 %401  ;;  %v399_v42 = vpop.permute.xlu0 %398 }
  0xca   : > { %vm430_vm2 = vcmp.eq.s32.totalorder %v402_v41, %v372_v37  ;;  %vm429_vm3 = vcmp.eq.s32.totalorder %v399_v42, %v372_v37 }
  0xcb   : > { %1488 = vmatprep.mubr.msk.f32.mxu1 %vm429_vm3, %v1834_v40 }
  0xcc   : > { %1489 = vmatmul.mubr.msk.f32.vlgmr.msra.gmra.mxu1 %vm430_vm2, %v1834_v40 }
  0xcd   : > { %v405_v33 = vpop.permute.xlu1 %404  ;;  %v381_v43 = vpop.permute.xlu0 %380 }
  0xce   : > { %vm431_vm4 = vcmp.eq.s32.totalorder %v405_v33, %v372_v37  ;;  %vm423_vm5 = vcmp.eq.s32.totalorder %v381_v43, %v372_v37 }
  0xcf   : > { %1479 = vmatprep.mubr.msk.f32.mxu0 %vm423_vm5, %v1834_v40  ;;  %1491 = vmatprep.mubr.msk.f32.mxu1 %vm431_vm4, %v1834_v40 }
  0xd1   : > { %v408_v44 = vpop.permute.xlu1 %407  ;;  %v384_v45 = vpop.permute.xlu0 %383 }
  0xd2   : > { %vm432_vm6 = vcmp.eq.s32.totalorder %v408_v44, %v372_v37  ;;  %vm424_vm7 = vcmp.eq.s32.totalorder %v384_v45, %v372_v37 }
  0xd3   : > { %1480 = vmatmul.mubr.msk.f32.gmra.mxu0 %vm424_vm7, %v1834_v40  ;;  %1492 = vmatmul.mubr.msk.f32.gmra.mxu1 %vm432_vm6, %v1834_v40 }
  0xd5   : > { %v411_v46 = vpop.permute.xlu1 %410  ;;  %v387_v47 = vpop.permute.xlu0 %386 }
  0xd6   : > { %vm433_vm8 = vcmp.eq.s32.totalorder %v411_v46, %v372_v37  ;;  %vm425_vm9 = vcmp.eq.s32.totalorder %v387_v47, %v372_v37 }
  0xd7   : > { %1482 = vmatprep.mubr.msk.f32.mxu0 %vm425_vm9, %v1834_v40  ;;  %1494 = vmatprep.mubr.msk.f32.mxu1 %vm433_vm8, %v1834_v40 }
  0xd9   : > { %v414_v48 = vpop.permute.xlu1 %413  ;;  %v390_v49 = vpop.permute.xlu0 %389 }
  0xda   : > { %vm434_vm10 = vcmp.eq.s32.totalorder %v414_v48, %v372_v37  ;;  %vm426_vm11 = vcmp.eq.s32.totalorder %v390_v49, %v372_v37 }
  0xdb   : > { %1483 = vmatmul.mubr.msk.f32.gmra.mxu0 %vm426_vm11, %v1834_v40  ;;  %1495 = vmatmul.mubr.msk.f32.gmra.mxu1 %vm434_vm10, %v1834_v40 }
  0xdd   : > { %v417_v50 = vpop.permute.xlu1 %416  ;;  %v393_v51 = vpop.permute.xlu0 %392 }
  0xde   : > { %vm435_vm12 = vcmp.eq.s32.totalorder %v417_v50, %v372_v37  ;;  %vm427_vm13 = vcmp.eq.s32.totalorder %v393_v51, %v372_v37 }
  0xdf   : > { %1485 = vmatprep.mubr.msk.f32.mxu0 %vm427_vm13, %v1834_v40  ;;  %1497 = vmatprep.mubr.msk.f32.mxu1 %vm435_vm12, %v1834_v40 }
  0xe1   : > { %v420_v52 = vpop.permute.xlu1 %419  ;;  %v396_v53 = vpop.permute.xlu0 %395 }
  0xe2   : > { %vm436_vm14 = vcmp.eq.s32.totalorder %v420_v52, %v372_v37  ;;  %vm428_vm15 = vcmp.eq.s32.totalorder %v396_v53, %v372_v37 }
  0xe3   : > { %1486 = vmatmul.mubr.msk.f32.gmra.mxu0 %vm428_vm15, %v1834_v40  ;;  %1498 = vmatmul.mubr.msk.f32.gmra.mxu1 %vm436_vm14, %v1834_v40 }
  0xe5   : > { %v1607_v54 = vpop.permute.xlu1 %1606  ;;  %v1602_v55 = vpop.permute.xlu0 %1601 }
  0xe6   : > { %v1609_v60 = vunpack.i.h.bf16 %v1607_v54  ;;  %v1608_v61 = vunpack.i.l.bf16 %v1607_v54  ;;  %v1604_v62 = vunpack.i.h.bf16 %v1602_v55  ;;  %v1603_v63 = vunpack.i.l.bf16 %v1602_v55 }
  0xe8   : > { %v766_v7 = vmul.f32 %v1609_v60, %v2127_v0  ;;  %v765_v8 = vmul.f32 %v1608_v61, %v2127_v0  ;;  %v764_v9 = vmul.f32 %v1604_v62, %v2127_v0  ;;  %v763_v10 = vmul.f32 %v1603_v63, %v2127_v0 }
  0xe9   : > { %v1617_v56 = vpop.permute.xlu1 %1616  ;;  %v1612_v57 = vpop.permute.xlu0 %1611 }
  0xea   : > { %v1619_v3 = vunpack.i.h.bf16 %v1617_v56  ;;  %v1618_v4 = vunpack.i.l.bf16 %v1617_v56  ;;  %v1614_v5 = vunpack.i.h.bf16 %v1612_v57  ;;  %v1613_v6 = vunpack.i.l.bf16 %v1612_v57 }
  0xec   : > { %v770_v22 = vmul.f32 %v1619_v3, %v2127_v0  ;;  %v769_v23 = vmul.f32 %v1618_v4, %v2127_v0  ;;  %v768_v24 = vmul.f32 %v1614_v5, %v2127_v0  ;;  %v767_v25 = vmul.f32 %v1613_v6, %v2127_v0 }
  0xed   : > { %v1627_v58 = vpop.permute.xlu1 %1626  ;;  %v1622_v59 = vpop.permute.xlu0 %1621 }
  0xee   : > { %v1629_v11 = vunpack.i.h.bf16 %v1627_v58  ;;  %v1628_v12 = vunpack.i.l.bf16 %v1627_v58  ;;  %v1624_v13 = vunpack.i.h.bf16 %v1622_v59  ;;  %v1623_v14 = vunpack.i.l.bf16 %v1622_v59 }
  0xf0   : > { %v774_v30 = vmul.f32 %v1629_v11, %v2127_v0  ;;  %v773_v31 = vmul.f32 %v1628_v12, %v2127_v0  ;;  %v772_v32 = vmul.f32 %v1624_v13, %v2127_v0  ;;  %v771_v34 = vmul.f32 %v1623_v14, %v2127_v0 }
  0xf1   : > { %v2129_v1 = vpop.permute.xlu1 %1636  ;;  %v2131_v2 = vpop.permute.xlu0 %1631 }
  0xf2   : > { %v1639_v44 = vunpack.i.h.bf16 %v2129_v1  ;;  %v1638_v45 = vunpack.i.l.bf16 %v2129_v1  ;;  %v1634_v46 = vunpack.i.h.bf16 %v2131_v2  ;;  %v1633_v47 = vunpack.i.l.bf16 %v2131_v2 }
  0xf4   : > { %v778_v13 = vmul.f32 %v1639_v44, %v2127_v0  ;;  %v777_v14 = vmul.f32 %v1638_v45, %v2127_v0 }
  0xf5   : > { %v1647_v16 = vpop.permute.xlu1 %1646  ;;  %v1642_v17 = vpop.permute.xlu0 %1641 }
  0xf6   : > { %v1649_v18 = vunpack.i.h.bf16 %v1647_v16  ;;  %v1648_v19 = vunpack.i.l.bf16 %v1647_v16  ;;  %v1644_v20 = vunpack.i.h.bf16 %v1642_v17  ;;  %v1643_v21 = vunpack.i.l.bf16 %v1642_v17 }
  0xf7   : > { %v776_v16 = vmul.f32 %v1634_v46, %v2127_v0  ;;  %v775_v17 = vmul.f32 %v1633_v47, %v2127_v0 }
  0xf8   : > { %v915_v26 = vmul.f32 %v1649_v18, %v2140_v15  ;;  %v914_v27 = vmul.f32 %v1648_v19, %v2140_v15  ;;  %v913_v28 = vmul.f32 %v1644_v20, %v2140_v15  ;;  %v912_v29 = vmul.f32 %v1643_v21, %v2140_v15 }
  0xf9   : > { %v1657_v35 = vpop.permute.xlu1 %1656  ;;  %v1652_v36 = vpop.permute.xlu0 %1651 }
  0xfa   : > { %v2154_v37 = vadd.f32 %v914_v27, %v765_v8  ;;  %v2156_v38 = vadd.f32 %v915_v26, %v766_v7  ;;  %v2158_v39 = vadd.f32 %v912_v29, %v763_v10  ;;  %v2160_v40 = vadd.f32 %v913_v28, %v764_v9 }
  0xfb   : > { %v1659_v41 = vunpack.i.h.bf16 %v1657_v35  ;;  %v1658_v42 = vunpack.i.l.bf16 %v1657_v35  ;;  %v1654_v33 = vunpack.i.h.bf16 %v1652_v36  ;;  %v1653_v43 = vunpack.i.l.bf16 %v1652_v36 }
  0xfd   : > { %v919_v48 = vmul.f32 %v1659_v41, %v2140_v15  ;;  %v918_v49 = vmul.f32 %v1658_v42, %v2140_v15  ;;  %v917_v50 = vmul.f32 %v1654_v33, %v2140_v15  ;;  %v916_v51 = vmul.f32 %v1653_v43, %v2140_v15  ;;  %v1667_v52 = vpop.permute.xlu1 %1666  ;;  %v1662_v53 = vpop.permute.xlu0 %1661 }
  0xfe   : > { %v1669_v54 = vunpack.i.h.bf16 %v1667_v52  ;;  %v1668_v55 = vunpack.i.l.bf16 %v1667_v52  ;;  %v1664_v56 = vunpack.i.h.bf16 %v1662_v53  ;;  %v1663_v57 = vunpack.i.l.bf16 %v1662_v53 }
  0xff   : > { %v2170_v58 = vadd.f32 %v918_v49, %v769_v23  ;;  %v2172_v59 = vadd.f32 %v919_v48, %v770_v22  ;;  %v2174_v60 = vadd.f32 %v916_v51, %v767_v25  ;;  %v2176_v61 = vadd.f32 %v917_v50, %v768_v24 }
 0x100   : > { %v923_v62 = vmul.f32 %v1669_v54, %v2140_v15  ;;  %v922_v63 = vmul.f32 %v1668_v55, %v2140_v15  ;;  %v921_v1 = vmul.f32 %v1664_v56, %v2140_v15  ;;  %v920_v2 = vmul.f32 %v1663_v57, %v2140_v15 }
 0x101   : > { %v1677_v3 = vpop.permute.xlu1 %1676  ;;  %v1672_v4 = vpop.permute.xlu0 %1671 }
 0x102   : > { %v2182_v5 = vadd.f32 %v922_v63, %v773_v31  ;;  %v2184_v6 = vadd.f32 %v923_v62, %v774_v30  ;;  %v2186_v7 = vadd.f32 %v920_v2, %v771_v34  ;;  %v2188_v8 = vadd.f32 %v921_v1, %v772_v32 }
 0x103   : > { %v1679_v9 = vunpack.i.h.bf16 %v1677_v3  ;;  %v1678_v10 = vunpack.i.l.bf16 %v1677_v3  ;;  %v1674_v11 = vunpack.i.h.bf16 %v1672_v4  ;;  %v1673_v12 = vunpack.i.l.bf16 %v1672_v4 }
 0x105   : > { %v927_v18 = vmul.f32 %v1679_v9, %v2140_v15  ;;  %v926_v19 = vmul.f32 %v1678_v10, %v2140_v15  ;;  %v925_v20 = vmul.f32 %v1674_v11, %v2140_v15  ;;  %v924_v21 = vmul.f32 %v1673_v12, %v2140_v15 }
 0x107   : > { %v2198_v22 = vadd.f32 %v926_v19, %v777_v14  ;;  %v2200_v23 = vadd.f32 %v927_v18, %v778_v13  ;;  %v2202_v24 = vadd.f32 %v924_v21, %v775_v17  ;;  %v2204_v25 = vadd.f32 %v925_v20, %v776_v16 }
 0x188   : > { %v1478_v26 = vpop.f32.mrf.mxu0 }
 0x18a   : > { %v551_v27 = vpop.f32.mrf.mxu0 }
 0x18c   : > { %v1490_v28 = vpop.f32.mrf.mxu1 }
 0x18e   : > { %v591_v0 = vpop.f32.mrf.mxu1 }
 0x193   : > { %v1481_v29 = vpop.f32.mrf.mxu0  ;;  %v1493_v30 = vpop.f32.mrf.mxu1 }
 0x195   : > { %v561_v31 = vpop.f32.mrf.mxu0  ;;  %v601_v32 = vpop.f32.mrf.mxu1 }
 0x19b   : > { %v1484_v34 = vpop.f32.mrf.mxu0  ;;  %v1496_v35 = vpop.f32.mrf.mxu1 }
 0x19d   : > { %v571_v36 = vpop.f32.mrf.mxu0  ;;  %v611_v15 = vpop.f32.mrf.mxu1 }
 0x1a3   : > { %v1487_v41 = vpop.f32.mrf.mxu0  ;;  %v1499_v42 = vpop.f32.mrf.mxu1 }
 0x1a5   : > { %v581_v33 = vpop.f32.mrf.mxu0  ;;  %v621_v43 = vpop.f32.mrf.mxu1 }
 0x1a6   : > { %1802 = dma.done.wait [#allocation3], 2048 }
 0x1a7   : > { %1803 = vsyncadd [#allocation3], 4294965248  ;;  %v947_v44 = vld [vmem:[#allocation2] sm:$0xff]  ;;  %v949_v45 = vld [vmem:[#allocation2 + $0x10] sm:$0xff]  ;;  %s1411_s23 = sshll.u32 %s1907_s13, 11  ;;  %s1248_s24 = sshll.u32 %s1967_s26, 4  ;;  %s2409_s24 = int_to_ptr.vmem [resolvable:$true] %s1248_s24 }
 0x1a8   : > { %v948_v46 = vld [vmem:[#allocation2 + $0x8] sm:$0xff]  ;;  %v963_v47 = vadd.f32 %v947_v44, %v551_v27  ;;  %v965_v48 = vadd.f32 %v949_v45, %v561_v31  ;;  %v950_v50 = vld [vmem:[#allocation2 + $0x18] sm:$0xff]  ;;  %v951_v51 = vld [vmem:[#allocation2 + $0x20] sm:$0xff]  ;;  %s2407_s28 = scalar_lea.hbm %s2463_s8, %s1411_s23  ;;  %s2471_s13 = sand.u32 1, %s1814_s11  }
 0x1a9   : > { %v964_v49 = vadd.f32 %v1478_v26, %v948_v46  ;;  %v966_v52 = vadd.f32 %v1481_v29, %v950_v50  ;;  %v952_v53 = vld [vmem:[#allocation2 + $0x28] sm:$0xff]  ;;  %v967_v56 = vadd.f32 %v951_v51, %v571_v36  ;;  %v953_v1 = vld [vmem:[#allocation2 + $0x30] sm:$0xff]  ;;  %v954_v2 = vld [vmem:[#allocation2 + $0x38] sm:$0xff]  ;;  %s2415_s30 = scalar_lea.sflag [#allocation8], %s2471_s13  ;;  %s1750_s17 = scalar_lea.vmem %s2409_s24, 2048 }
 0x1aa   : > { %v979_v54 = vadd.f32 %v963_v47, %v2158_v39  ;;  %v981_v55 = vadd.f32 %v965_v48, %v2154_v37  ;;  %v968_v63 = vadd.f32 %v1484_v34, %v952_v53  ;;  %v969_v3 = vadd.f32 %v953_v1, %v581_v33  ;;  %v955_v37 = vld [vmem:[#allocation2 + $0x40] sm:$0xff]  ;;  %v956_v10 = vld [vmem:[#allocation2 + $0x48] sm:$0xff]  ;;  %v957_v13 = vld [vmem:[#allocation2 + $0x50] sm:$0xff]  ;;  %p1751_p0 = scmp.ne.s32.totalorder %s2409_s24, %s1750_s17  ;;  %s1835_s4 = smov [#allocation9]  }
 0x1ab   : > { %v980_v57 = vadd.f32 %v964_v49, %v2160_v40  ;;  %v982_v62 = vadd.f32 %v966_v52, %v2156_v38  ;;  %v983_v4 = vadd.f32 %v967_v56, %v2174_v60  ;;  %v970_v39 = vadd.f32 %v1487_v41, %v954_v2  ;;  %v958_v14 = vld [vmem:[#allocation2 + $0x58] sm:$0xff]  ;;  %v959_v17 = vld [vmem:[#allocation2 + $0x60] sm:$0xff]  ;;  %v960_v18 = vld [vmem:[#allocation2 + $0x68] sm:$0xff]  ;;  %s1754_s18 = sshll.u32 %s1835_s4, 4  ;;  %s1755_s18 = int_to_ptr.vmem [resolvable:$false] %s1754_s18 }
 0x1ac   : > { %995 = vadd.xlane.f32.xlu0 %v979_v54  ;;  %999 = vadd.xlane.f32.xlu1 %v981_v55  ;;  %v2212_v9 = vadd.f32 %v968_v63, %v2176_v61  ;;  %v2215_v11 = vadd.f32 %v969_v3, %v2170_v58  ;;  %v971_v40 = vadd.f32 %v955_v37, %v591_v0  ;;  %v962_v26 = vld [vmem:[#allocation2 + $0x78] sm:$0xff]  ;;  %p1752_p1 = pnand %p1751_p0, %p1924_p10  ;;  %s1756_s29 = scalar_lea.vmem %s1755_s18, 4096 }
 0x1ad   : > { %v2219_v38 = vadd.f32 %v970_v39, %v2172_v59  ;;  %v972_v12 = vadd.f32 %v1490_v28, %v956_v10  ;;  %v973_v60 = vadd.f32 %v957_v13, %v601_v32  ;;  %v974_v16 = vadd.f32 %v1493_v30, %v958_v14  ;;  %p1757_p3 = scmp.lt.s32.totalorder %s2409_s24, %s1755_s18  ;;  %p1758_p4 = scmp.lt.s32.totalorder %s1756_s29, %s1750_s17 }
 0x1ae   : > { %v2224_v61 = vadd.f32 %v971_v40, %v2186_v7  ;;  %v975_v59 = vadd.f32 %v959_v17, %v611_v15  ;;  %v976_v21 = vadd.f32 %v1496_v35, %v960_v18  ;;  %v961_v7 = vld [vmem:[#allocation2 + $0x70] sm:$0xff]  ;;  %v978_v0 = vadd.f32 %v1499_v42, %v962_v26  ;;  %p1753_p2 = pneg %p1752_p1 }
 0x1af   : > { %v2227_v58 = vadd.f32 %v972_v12, %v2188_v8  ;;  %v2232_v19 = vadd.f32 %v973_v60, %v2182_v5  ;;  %v2235_v20 = vadd.f32 %v974_v16, %v2184_v6  ;;  %v977_v27 = vadd.f32 %v961_v7, %v621_v43  ;;  %p1759_p5 = por %p1758_p4, %p1757_p3 }
 0x1b0   : > { %997 = vadd.xlane.f32.xlu0 %v980_v57  ;;  %1001 = vadd.xlane.f32.xlu1 %v982_v62  ;;  %v2240_v8 = vadd.f32 %v975_v59, %v2202_v24  ;;  %v2243_v28 = vadd.f32 %v976_v21, %v2204_v25  ;;  %v2251_v6 = vadd.f32 %v978_v0, %v2200_v23 }
 0x1b1   : > { %v2248_v5 = vadd.f32 %v977_v27, %v2198_v22  ;;  %p1760_p6 = pnand %p1759_p5, %p1753_p2 }
 0x1b4   : > { %1003 = vadd.xlane.f32.xlu0 %v983_v4  ;;  %1005 = vadd.xlane.f32.xlu1 %v2212_v9 }
 0x1b8   : > { %1007 = vadd.xlane.f32.xlu0 %v2215_v11  ;;  %1009 = vadd.xlane.f32.xlu1 %v2219_v38 }
 0x1bc   : > { %1011 = vadd.xlane.f32.xlu0 %v2224_v61  ;;  %1013 = vadd.xlane.f32.xlu1 %v2227_v58 }
 0x1c0   : > { %1015 = vadd.xlane.f32.xlu0 %v2232_v19  ;;  %1017 = vadd.xlane.f32.xlu1 %v2235_v20 }
 0x1c4   : > { %1019 = vadd.xlane.f32.xlu0 %v2240_v8  ;;  %1021 = vadd.xlane.f32.xlu1 %v2243_v28 }
 0x1c8   : > { %1023 = vadd.xlane.f32.xlu0 %v2248_v5  ;;  %1025 = vadd.xlane.f32.xlu1 %v2251_v6 }
 0x235   : > { %v996_v24 = vpop.xlane.xlu0 %995  ;;  %v1000_v29 = vpop.xlane.xlu1 %999 }
 0x236   : > { %v1028_v30 = vmul.f32 0.0078125, %v996_v24  ;;  %v1030_v25 = vmul.f32 0.0078125, %v1000_v29 }
 0x238   : > { %v2255_v31 = vsub.f32 %v979_v54, %v1028_v30  ;;  %v2257_v32 = vsub.f32 %v981_v55, %v1030_v25 }
 0x239   : > { %v998_v34 = vpop.xlane.xlu0 %997  ;;  %v1002_v35 = vpop.xlane.xlu1 %1001 }
 0x23a   : > { %v1029_v36 = vmul.f32 0.0078125, %v998_v34  ;;  %v1060_v22 = vmul.f32 %v2255_v31, %v2255_v31  ;;  %v1031_v23 = vmul.f32 0.0078125, %v1002_v35  ;;  %v1062_v42 = vmul.f32 %v2257_v32, %v2257_v32 }
 0x23c   : > { %v2261_v15 = vsub.f32 %v980_v57, %v1029_v36  ;;  %1076 = vadd.xlane.f32.xlu0 %v1060_v22  ;;  %v2263_v41 = vsub.f32 %v982_v62, %v1031_v23 }
 0x23d   : > { %v1004_v33 = vpop.xlane.xlu0 %1003  ;;  %v1006_v43 = vpop.xlane.xlu1 %1005 }
 0x23e   : > { %v1032_v44 = vmul.f32 0.0078125, %v1004_v33  ;;  %v1061_v45 = vmul.f32 %v2261_v15, %v2261_v15  ;;  %v1033_v46 = vmul.f32 0.0078125, %v1006_v43  ;;  %v1063_v49 = vmul.f32 %v2263_v41, %v2263_v41 }
 0x240   : > { %v2269_v47 = vsub.f32 %v983_v4, %v1032_v44  ;;  %1080 = vadd.xlane.f32.xlu0 %v1062_v42  ;;  %1078 = vadd.xlane.f32.xlu1 %v1061_v45  ;;  %v2272_v48 = vsub.f32 %v2212_v9, %v1033_v46 }
 0x241   : > { %v1008_v50 = vpop.xlane.xlu0 %1007  ;;  %v1010_v51 = vpop.xlane.xlu1 %1009 }
 0x242   : > { %v1034_v52 = vmul.f32 0.0078125, %v1008_v50  ;;  %v1064_v53 = vmul.f32 %v2269_v47, %v2269_v47  ;;  %v1035_v54 = vmul.f32 0.0078125, %v1010_v51  ;;  %v1065_v57 = vmul.f32 %v2272_v48, %v2272_v48 }
 0x244   : > { %v2279_v55 = vsub.f32 %v2215_v11, %v1034_v52  ;;  %1082 = vadd.xlane.f32.xlu1 %v1063_v49  ;;  %1084 = vadd.xlane.f32.xlu0 %v1064_v53  ;;  %v2282_v56 = vsub.f32 %v2219_v38, %v1035_v54 }
 0x245   : > { %v1012_v62 = vpop.xlane.xlu0 %1011  ;;  %v1014_v63 = vpop.xlane.xlu1 %1013 }
 0x246   : > { %v1036_v1 = vmul.f32 0.0078125, %v1012_v62  ;;  %v1066_v2 = vmul.f32 %v2279_v55, %v2279_v55  ;;  %v1037_v3 = vmul.f32 0.0078125, %v1014_v63  ;;  %v1067_v39 = vmul.f32 %v2282_v56, %v2282_v56 }
 0x248   : > { %v2289_v4 = vsub.f32 %v2224_v61, %v1036_v1  ;;  %1086 = vadd.xlane.f32.xlu1 %v1065_v57  ;;  %1088 = vadd.xlane.f32.xlu0 %v1066_v2  ;;  %v2292_v9 = vsub.f32 %v2227_v58, %v1037_v3  ;;  %v2333_v3 = vld [vmem:[%s2461_s6] ss:$0 sm:$0xff] }
 0x249   : > { %v1016_v37 = vpop.xlane.xlu0 %1015  ;;  %v1018_v10 = vpop.xlane.xlu1 %1017 }
 0x24a   : > { %v1038_v11 = vmul.f32 0.0078125, %v1016_v37  ;;  %v1068_v38 = vmul.f32 %v2289_v4, %v2289_v4  ;;  %v1039_v40 = vmul.f32 0.0078125, %v1018_v10  ;;  %v1069_v14 = vmul.f32 %v2292_v9, %v2292_v9 }
 0x24c   : > { %v2299_v12 = vsub.f32 %v2232_v19, %v1038_v11  ;;  %1090 = vadd.xlane.f32.xlu1 %v1067_v39  ;;  %1092 = vadd.xlane.f32.xlu0 %v1068_v38  ;;  %v2302_v13 = vsub.f32 %v2235_v20, %v1039_v40  ;;  %v2339_v11 = vld [vmem:[%s2462_s7] ss:$0 sm:$0xff] }
 0x24d   : > { %v1020_v60 = vpop.xlane.xlu0 %1019  ;;  %v1022_v61 = vpop.xlane.xlu1 %1021 }
 0x24e   : > { %v1040_v58 = vmul.f32 0.0078125, %v1020_v60  ;;  %v1070_v16 = vmul.f32 %v2299_v12, %v2299_v12  ;;  %v1041_v17 = vmul.f32 0.0078125, %v1022_v61  ;;  %v1071_v19 = vmul.f32 %v2302_v13, %v2302_v13 }
 0x250   : > { %v2309_v18 = vsub.f32 %v2240_v8, %v1040_v58  ;;  %1094 = vadd.xlane.f32.xlu1 %v1069_v14  ;;  %1096 = vadd.xlane.f32.xlu0 %v1070_v16  ;;  %v2312_v59 = vsub.f32 %v2243_v28, %v1041_v17 }
 0x251   : > { %v1024_v20 = vpop.xlane.xlu0 %1023  ;;  %v1026_v21 = vpop.xlane.xlu1 %1025 }
 0x252   : > { %v1042_v7 = vmul.f32 0.0078125, %v1024_v20  ;;  %v1072_v26 = vmul.f32 %v2309_v18, %v2309_v18  ;;  %v1043_v27 = vmul.f32 0.0078125, %v1026_v21  ;;  %v1073_v28 = vmul.f32 %v2312_v59, %v2312_v59 }
 0x254   : > { %v2319_v0 = vsub.f32 %v2248_v5, %v1042_v7  ;;  %1098 = vadd.xlane.f32.xlu1 %v1071_v19  ;;  %1100 = vadd.xlane.f32.xlu0 %v1072_v26  ;;  %v2322_v8 = vsub.f32 %v2251_v6, %v1043_v27 }
 0x256   : > { %v1074_v24 = vmul.f32 %v2319_v0, %v2319_v0  ;;  %v1075_v29 = vmul.f32 %v2322_v8, %v2322_v8 }
 0x258   : > { %1102 = vadd.xlane.f32.xlu1 %v1073_v28  ;;  %1104 = vadd.xlane.f32.xlu0 %v1074_v24 }
 0x25c   : > { %1106 = vadd.xlane.f32.xlu1 %v1075_v29 }
 0x2c5   : > { %v1077_v30 = vpop.xlane.xlu0 %1076 }
 0x2c6   : > { %v1108_v5 = vmul.f32 0.0078125, %v1077_v30 }
 0x2c8   : > { %v1124_v25 = vadd.f32 1e-12, %v1108_v5 }
 0x2c9   : > { %v1079_v34 = vpop.xlane.xlu1 %1078  ;;  %v1081_v35 = vpop.xlane.xlu0 %1080 }
 0x2ca   : > { %1680 = vrsqrt.f32 %v1124_v25  ;;  %v1109_v6 = vmul.f32 0.0078125, %v1079_v34  ;;  %v1110_v36 = vmul.f32 0.0078125, %v1081_v35 }
 0x2cc   : > { %v1125_v22 = vadd.f32 1e-12, %v1109_v6  ;;  %v1126_v23 = vadd.f32 1e-12, %v1110_v36 }
 0x2cd   : > { %v1083_v42 = vpop.xlane.xlu1 %1082  ;;  %v1085_v33 = vpop.xlane.xlu0 %1084 }
 0x2ce   : > { %1682 = vrsqrt.f32 %v1125_v22  ;;  %v1111_v43 = vmul.f32 0.0078125, %v1083_v42  ;;  %v1112_v44 = vmul.f32 0.0078125, %v1085_v33 }
 0x2cf   : > { %1684 = vrsqrt.f32 %v1126_v23 }
 0x2d0   : > { %v1127_v45 = vadd.f32 1e-12, %v1111_v43  ;;  %v1128_v46 = vadd.f32 1e-12, %v1112_v44 }
 0x2d1   : > { %v1087_v49 = vpop.xlane.xlu1 %1086  ;;  %v1089_v50 = vpop.xlane.xlu0 %1088 }
 0x2d2   : > { %1686 = vrsqrt.f32 %v1127_v45  ;;  %v1113_v51 = vmul.f32 0.0078125, %v1087_v49  ;;  %v1114_v52 = vmul.f32 0.0078125, %v1089_v50 }
 0x2d3   : > { %1688 = vrsqrt.f32 %v1128_v46 }
 0x2d4   : > { %v1129_v53 = vadd.f32 1e-12, %v1113_v51  ;;  %v1130_v54 = vadd.f32 1e-12, %v1114_v52 }
 0x2d5   : > { %v1091_v57 = vpop.xlane.xlu1 %1090  ;;  %v1093_v62 = vpop.xlane.xlu0 %1092 }
 0x2d6   : > { %1690 = vrsqrt.f32 %v1129_v53  ;;  %v1115_v63 = vmul.f32 0.0078125, %v1091_v57  ;;  %v1116_v1 = vmul.f32 0.0078125, %v1093_v62 }
 0x2d7   : > { %v1681_v2 = vpop.eup %1680  ;;  %1692 = vrsqrt.f32 %v1130_v54 }
 0x2d8   : > { %v1156_v39 = vmul.f32 %v1681_v2, %v2255_v31  ;;  %v1131_v37 = vadd.f32 1e-12, %v1115_v63  ;;  %v1132_v10 = vadd.f32 1e-12, %v1116_v1 }
 0x2d9   : > { %v1095_v38 = vpop.xlane.xlu1 %1094  ;;  %v1097_v40 = vpop.xlane.xlu0 %1096 }
 0x2da   : > { %v1179_v14 = vmul.f32 %v2333_v3, %v1156_v39  ;;  %1694 = vrsqrt.f32 %v1131_v37  ;;  %v1117_v60 = vmul.f32 0.0078125, %v1095_v38  ;;  %v1118_v61 = vmul.f32 0.0078125, %v1097_v40 }
 0x2db   : > { %v1683_v58 = vpop.eup %1682  ;;  %1696 = vrsqrt.f32 %v1132_v10 }
 0x2dc   : > { %v1685_v16 = vpop.eup %1684  ;;  %v1202_v31 = vadd.f32 %v2339_v11, %v1179_v14  ;;  %v1157_v17 = vmul.f32 %v1683_v58, %v2261_v15  ;;  %v1133_v19 = vadd.f32 1e-12, %v1117_v60  ;;  %v1134_v20 = vadd.f32 1e-12, %v1118_v61 }
 0x2dd   : > { %v1158_v21 = vmul.f32 %v1685_v16, %v2257_v32  ;;  %v1099_v7 = vpop.xlane.xlu1 %1098  ;;  %v1101_v26 = vpop.xlane.xlu0 %1100 }
 0x2de   : > { %1218 = vst [vmem:[%s1967_s26] sm:$0xff] %v1202_v31  ;;  %v1180_v27 = vmul.f32 %v2333_v3, %v1157_v17  ;;  %1698 = vrsqrt.f32 %v1133_v19  ;;  %v1119_v28 = vmul.f32 0.0078125, %v1099_v7  ;;  %v1120_v24 = vmul.f32 0.0078125, %v1101_v26 }
 0x2df   : > { %v1687_v29 = vpop.eup %1686  ;;  %v1181_v30 = vmul.f32 %v2333_v3, %v1158_v21  ;;  %1700 = vrsqrt.f32 %v1134_v20 }
 0x2e0   : > { %v1689_v5 = vpop.eup %1688  ;;  %v1203_v15 = vadd.f32 %v2339_v11, %v1180_v27  ;;  %v1159_v25 = vmul.f32 %v1687_v29, %v2263_v41  ;;  %v1135_v32 = vadd.f32 1e-12, %v1119_v28  ;;  %v1136_v34 = vadd.f32 1e-12, %v1120_v24 }
 0x2e1   : > { %v1204_v35 = vadd.f32 %v2339_v11, %v1181_v30  ;;  %v1160_v6 = vmul.f32 %v1689_v5, %v2269_v47  ;;  %v1103_v36 = vpop.xlane.xlu1 %1102  ;;  %v1105_v22 = vpop.xlane.xlu0 %1104 }
 0x2e2   : > { %1219 = vst [vmem:[%s1967_s26 + $0x8] sm:$0xff] %v1203_v15  ;;  %v1182_v23 = vmul.f32 %v2333_v3, %v1159_v25  ;;  %1702 = vrsqrt.f32 %v1135_v32  ;;  %v1121_v42 = vmul.f32 0.0078125, %v1103_v36  ;;  %v1122_v33 = vmul.f32 0.0078125, %v1105_v22 }
 0x2e3   : > { %v1691_v43 = vpop.eup %1690  ;;  %1220 = vst [vmem:[%s1967_s26 + $0x10] sm:$0xff] %v1204_v35  ;;  %v1183_v41 = vmul.f32 %v2333_v3, %v1160_v6  ;;  %1704 = vrsqrt.f32 %v1136_v34 }
 0x2e4   : > { %v1693_v44 = vpop.eup %1692  ;;  %v1205_v45 = vadd.f32 %v2339_v11, %v1182_v23  ;;  %v1161_v47 = vmul.f32 %v1691_v43, %v2272_v48  ;;  %v1137_v46 = vadd.f32 1e-12, %v1121_v42  ;;  %v1138_v49 = vadd.f32 1e-12, %v1122_v33 }
 0x2e5   : > { %v1206_v50 = vadd.f32 %v2339_v11, %v1183_v41  ;;  %v1162_v51 = vmul.f32 %v1693_v44, %v2279_v55  ;;  %v1107_v52 = vpop.xlane.xlu1 %1106 }
 0x2e6   : > { %1221 = vst [vmem:[%s1967_s26 + $0x18] sm:$0xff] %v1205_v45  ;;  %v1184_v53 = vmul.f32 %v2333_v3, %v1161_v47  ;;  %1706 = vrsqrt.f32 %v1137_v46  ;;  %v1123_v54 = vmul.f32 0.0078125, %v1107_v52 }
 0x2e7   : > { %v1695_v57 = vpop.eup %1694  ;;  %1222 = vst [vmem:[%s1967_s26 + $0x20] sm:$0xff] %v1206_v50  ;;  %v1185_v62 = vmul.f32 %v2333_v3, %v1162_v51  ;;  %1708 = vrsqrt.f32 %v1138_v49 }
 0x2e8   : > { %v1697_v48 = vpop.eup %1696  ;;  %v1207_v63 = vadd.f32 %v2339_v11, %v1184_v53  ;;  %v1163_v1 = vmul.f32 %v1695_v57, %v2282_v56  ;;  %v1139_v55 = vadd.f32 1e-12, %v1123_v54 }
 0x2e9   : > { %v1208_v2 = vadd.f32 %v2339_v11, %v1185_v62  ;;  %v1164_v39 = vmul.f32 %v1697_v48, %v2289_v4 }
 0x2ea   : > { %1223 = vst [vmem:[%s1967_s26 + $0x28] sm:$0xff] %v1207_v63  ;;  %v1186_v37 = vmul.f32 %v2333_v3, %v1163_v1  ;;  %1710 = vrsqrt.f32 %v1139_v55 }
 0x2eb   : > { %v1699_v10 = vpop.eup %1698  ;;  %1224 = vst [vmem:[%s1967_s26 + $0x30] sm:$0xff] %v1208_v2  ;;  %v1187_v38 = vmul.f32 %v2333_v3, %v1164_v39 }
 0x2ec   : > { %v1701_v40 = vpop.eup %1700  ;;  %v1209_v14 = vadd.f32 %v2339_v11, %v1186_v37  ;;  %v1165_v56 = vmul.f32 %v1699_v10, %v2292_v9 }
 0x2ed   : > { %v1210_v60 = vadd.f32 %v2339_v11, %v1187_v38  ;;  %v1166_v61 = vmul.f32 %v1701_v40, %v2299_v12 }
 0x2ee   : > { %1225 = vst [vmem:[%s1967_s26 + $0x38] sm:$0xff] %v1209_v14  ;;  %v1188_v4 = vmul.f32 %v2333_v3, %v1165_v56 }
 0x2ef   : > { %v1703_v58 = vpop.eup %1702  ;;  %1226 = vst [vmem:[%s1967_s26 + $0x40] sm:$0xff] %v1210_v60  ;;  %v1189_v16 = vmul.f32 %v2333_v3, %v1166_v61 }
 0x2f0   : > { %v1705_v31 = vpop.eup %1704  ;;  %v1211_v17 = vadd.f32 %v2339_v11, %v1188_v4  ;;  %v1167_v19 = vmul.f32 %v1703_v58, %v2302_v13 }
 0x2f1   : > { %v1212_v9 = vadd.f32 %v2339_v11, %v1189_v16  ;;  %v1168_v20 = vmul.f32 %v1705_v31, %v2309_v18 }
 0x2f2   : > { %1227 = vst [vmem:[%s1967_s26 + $0x48] sm:$0xff] %v1211_v17  ;;  %v1190_v12 = vmul.f32 %v2333_v3, %v1167_v19 }
 0x2f3   : > { %v1707_v21 = vpop.eup %1706  ;;  %1228 = vst [vmem:[%s1967_s26 + $0x50] sm:$0xff] %v1212_v9  ;;  %v1191_v7 = vmul.f32 %v2333_v3, %v1168_v20 }
 0x2f4   : > { %v1709_v26 = vpop.eup %1708  ;;  %v1213_v27 = vadd.f32 %v2339_v11, %v1190_v12  ;;  %v1169_v13 = vmul.f32 %v1707_v21, %v2312_v59 }
 0x2f5   : > { %v1214_v28 = vadd.f32 %v2339_v11, %v1191_v7  ;;  %v1170_v18 = vmul.f32 %v1709_v26, %v2319_v0 }
 0x2f6   : > { %1229 = vst [vmem:[%s1967_s26 + $0x58] sm:$0xff] %v1213_v27  ;;  %v1192_v24 = vmul.f32 %v2333_v3, %v1169_v13 }
 0x2f7   : > { %v1711_v29 = vpop.eup %1710  ;;  %1230 = vst [vmem:[%s1967_s26 + $0x60] sm:$0xff] %v1214_v28  ;;  %v1193_v30 = vmul.f32 %v2333_v3, %v1170_v18 }
 0x2f8   : > { %v1215_v5 = vadd.f32 %v2339_v11, %v1192_v24  ;;  %v1171_v15 = vmul.f32 %v1711_v29, %v2322_v8 }
 0x2f9   : > { %v1216_v59 = vadd.f32 %v2339_v11, %v1193_v30 }
 0x2fa   : > { %1231 = vst [vmem:[%s1967_s26 + $0x68] sm:$0xff] %v1215_v5  ;;  %v1194_v0 = vmul.f32 %v2333_v3, %v1171_v15 }
 0x2fb   : > { %1232 = vst [vmem:[%s1967_s26 + $0x70] sm:$0xff] %v1216_v59 }
 0x2fc   : > { %v1217_v8 = vadd.f32 %v2339_v11, %v1194_v0 }
 0x2fe   : > { %1233 = vst [vmem:[%s1967_s26 + $0x78] sm:$0xff] %v1217_v8 }
 0x2ff   : > { %1763 = shalt.err (!%p1760_p6)
}
 0x300   : > { %s1764_s26 = scalar_lea.hbm %s2407_s28, 2048  ;;  %s1768_s16 = scalar_lea.hbm %s2463_s8, 4096 }
 0x301   : > { %p1765_p7 = scmp.ne.s32.totalorder %s2407_s28, %s1764_s26  ;;  %p1769_p12 = scmp.lt.s32.totalorder %s2407_s28, %s2463_s8 }
 0x302   : > { %p1770_p11 = scmp.lt.s32.totalorder %s1768_s16, %s1764_s26 }
 0x303   : > { %p1766_p8 = pnand %p1765_p7, %p1924_p10 }
 0x304   : > { %p1771_p13 = por %p1770_p11, %p1769_p12 }
 0x305   : > { %p1767_p9 = pneg %p1766_p8 }
 0x307   : > { %p1772_p0 = pnand %p1771_p13, %p1767_p9 }
 0x309   : > { %1775 = shalt.err (!%p1772_p0)
}
 0x30a   : > { %s1836_s23 = smov 128   ;;  %s1837_s25 = smov 8  }
 0x30b   : > { %1536 = dma.vmem_to_hbm [thread:$0]  (%p1924_p10), %s2409_s24, 2048, %s2407_s28, %s2415_s30, %s1836_s23, %s1836_s23, %s1837_s25  }
 0x30c PF: > { %p1548_p1 = scmp.ge.s32.totalorder %s1822_s12, 2  ;;  %s1263_s27 = sand.u32 1, %s1810_s10  }
 0x30d   : > { %p2472_p2 = scmp.ne.s32.totalorder %s2468_s20, 0  ;;  %s1264_s13 = scalar_lea.sflag [#allocation8], %s1263_s27 }
 0x30f   : > { %p1543_p3 = pnand %p1548_p1, %p2472_p2 }
 0x311   : > { %p1544_p4 = pneg %p1543_p3 }
 0x313   : > { %1805 = dma.done.wait (%p1544_p4), %s1264_s13, 2048  }
 0x314   : > { %1807 = vsyncadd (%p1544_p4), %s1264_s13, 4294965248  ;;  %s2473_s17 = sld [smem:[#allocation15_spill]]  ;;  %p25_p5 = scmp.ge.s32.totalorder %s1911_s15, 4  }
 0x315   : > { %s2474_s10 = smov %s1814_s11  ;;  %s2475_s11 = smov %s1818_s0 }
 0x316   : > { %s2477_s12 = smov %s1911_s15  ;;  %27 = sbr.rel (!%p25_p5) target bundleno = 19 (0x13), region = 147 }
 0x31a   : > { %s2476_s0 = smov %s2473_s17 }
 0x31b   :  { %1269 = vsyncpa [#allocation7], 1 }
 0x31c   :  { %1271 = vsyncpa [#allocation7 + $0x1], 1 }
 0x31d   :  { %1272 = vsyncpa [#allocation8], 1 }
 0x31e   :  { %1274 = vsyncpa [#allocation8 + $0x1], 1 }
 0x31f   :  { %1275 = vsyncmov [#allocation3] }
 0x322   :  { %s1276_s12 = vpop.sfrf %1275 }
 0x323   :  { %p1410_p10 = scmp.ne.s32.totalorder %s1276_s12, 0 }
 0x325   :  { %1280 = shalt.err (%p1410_p10)  }

</bundles_post_ra>
